<compile_context>
chip_gen: v5e
topology: v5e:2x2
jax: 0.10.0
libtpu: 0.0.40
codegen_flags: <defaults>
</compile_context>

<pallas_src>
import jax
import jax.numpy as jnp
from jax.experimental import pallas as pl
from jax.experimental.pallas import tpu as pltpu

LANE = 128          # vreg lane width (last dim)
SUBLANE_BF16 = 16   # bf16 packs 16 rows per sublane group


def _round_up(n, m):
    return ((n + m - 1) // m) * m


def mlp_kernel(x_ref, w1_ref, b1_ref, w2_ref, b2_ref, w3_ref, b3_ref, o_ref):
    """One batch tile of the fused 3-layer MLP.

    x_ref: (TILE_B, D_in) f32 or bf16 (streamed per grid step).
    w*_ref: bf16 weights, b*_ref: f32 biases — stationary across the grid.
    MXU accumulates in f32; bias-add + ReLU stay f32 on the VPU; the final
    store is bf16 (lane-padded output block -> halve writeback bytes).
    """
    x = x_ref[...].astype(jnp.bfloat16)   # in-kernel cast hides under MXU slot

    # Layer 1: Linear + ReLU
    h1 = jnp.dot(x, w1_ref[...], preferred_element_type=jnp.float32)
    h1 = jnp.maximum(h1 + b1_ref[...], 0.0)
    # TODO(synk): Dropout(0.5) is identity (eval mode). Training-mode parity
    # would need pltpu.prng_seed + pltpu.prng_random_bits for a Bernoulli mask
    # plus 2x scale.

    # Layer 2: Linear + ReLU
    h2 = jnp.dot(h1.astype(jnp.bfloat16), w2_ref[...],
                 preferred_element_type=jnp.float32)
    h2 = jnp.maximum(h2 + b2_ref[...], 0.0)

    # Layer 3: Linear + ReLU
    h3 = jnp.dot(h2.astype(jnp.bfloat16), w3_ref[...],
                 preferred_element_type=jnp.float32)
    o_ref[...] = jnp.maximum(h3 + b3_ref[...], 0.0).astype(o_ref.dtype)


def neural_net_forward(x, params, num_classes):
    """Fused MLP forward: parallel batch grid, weight-stationary VMEM tiling.

    `params` are the pre-padded, pre-cast arrays returned by init_params.
    """
    w1p, b1p, w2p, b2p, w3p, b3p = params
    batch, d_in = x.shape
    d_in_p, hid_p = w1p.shape
    cls_p = w3p.shape[1]

    # Batch tiling: aim for ~2 balanced tiles (keeps both v7x TensorCores busy
    # under dimension_semantics=("parallel",)), cap at 512 rows so each serial
    # grid step on v5e/v6e does enough work to amortize the fixed step cost.
    tile_b = min(512, _round_up(max(1, pl.cdiv(batch, 2)), SUBLANE_BF16))
    batch_p = _round_up(batch, tile_b)

    # Only materialize a padded copy of x when its shape is not already
    # lane/sublane aligned; in that case pad in bf16 (half the HBM bytes).
    if d_in != d_in_p or batch != batch_p:
        xp = jnp.pad(x.astype(jnp.bfloat16),
                     ((0, batch_p - batch), (0, d_in_p - d_in)))
    else:
        xp = x  # stream f32 directly; cast happens inside the kernel

    def stationary(shape):
        # Same block every grid step -> DMA'd once, VMEM-resident.
        # Buffered(1): no point double-buffering a block that never changes.
        return pl.BlockSpec(shape, lambda i: (0, 0),
                            pipeline_mode=pl.Buffered(1))

    # VMEM budget: single-buffered stationary params, double-buffered x/out
    # tiles, f32 hidden temporaries, plus headroom for compiler scratch.
    weight_bytes = sum(int(p.size) * p.dtype.itemsize for p in params)
    x_tile_bytes = tile_b * d_in_p * xp.dtype.itemsize
    out_tile_bytes = tile_b * cls_p * 2                  # bf16 output tile
    act_bytes = 2 * tile_b * hid_p * 4                   # h1/h2 f32 temporaries
    vmem_limit_bytes = int(weight_bytes + 2 * x_tile_bytes
                           + 2 * out_tile_bytes + act_bytes + (4 << 20))
    vmem_limit_bytes = min(vmem_limit_bytes, 100 << 20)

    cost = pl.CostEstimate(
        flops=2 * batch_p * (d_in_p * hid_p + hid_p * hid_p + hid_p * cls_p),
        transcendentals=0,
        bytes_accessed=int(batch_p * d_in_p * xp.dtype.itemsize
                           + weight_bytes + batch_p * cls_p * 2),
    )

    out = pl.pallas_call(
        mlp_kernel,
        out_shape=jax.ShapeDtypeStruct((batch_p, cls_p), jnp.bfloat16),
        grid=(batch_p // tile_b,),
        in_specs=[
            pl.BlockSpec((tile_b, d_in_p), lambda i: (i, 0)),  # x: streamed
            stationary((d_in_p, hid_p)),                       # W1
            stationary((1, hid_p)),                            # b1
            stationary((hid_p, hid_p)),                        # W2
            stationary((1, hid_p)),                            # b2
            stationary((hid_p, cls_p)),                        # W3
            stationary((1, cls_p)),                            # b3
        ],
        out_specs=pl.BlockSpec((tile_b, cls_p), lambda i: (i, 0)),
        compiler_params=pltpu.CompilerParams(
            dimension_semantics=("parallel",),   # batch tiles are independent
            vmem_limit_bytes=vmem_limit_bytes,
        ),
        cost_estimate=cost,
    )(xp, w1p, b1p, w2p, b2p, w3p, b3p)

    # Restore logical shape/dtype of the PyTorch module's output.  Consumers
    # tolerant of lane padding / bf16 could skip this and save one small pass.
    return out[:batch, :num_classes].astype(jnp.float32)


def init_params(key, input_size, hidden_size, num_classes):
    """Init mirroring nn.Linear's uniform(-1/sqrt(fan_in), +1/sqrt(fan_in)).

    Weights are stored as (in, out), pre-padded to 128-lane multiples and
    pre-cast to bf16 (MXU native); biases stay f32, zero-padded.  Doing this
    once at init removes all per-forward-call weight padding HBM traffic.
    """
    ks = jax.random.split(key, 6)
    d_in_p = _round_up(input_size, LANE)
    hid_p = _round_up(hidden_size, LANE)
    cls_p = _round_up(num_classes, LANE)

    def linear(kw, kb, fan_in, fan_out, fan_in_p, fan_out_p):
        bound = 1.0 / float(fan_in) ** 0.5
        w = jax.random.uniform(kw, (fan_in, fan_out), jnp.float32, -bound, bound)
        b = jax.random.uniform(kb, (1, fan_out), jnp.float32, -bound, bound)
        wp = jnp.pad(w, ((0, fan_in_p - fan_in),
                         (0, fan_out_p - fan_out))).astype(jnp.bfloat16)
        bp = jnp.pad(b, ((0, 0), (0, fan_out_p - fan_out)))
        return wp, bp

    w1, b1 = linear(ks[0], ks[1], input_size, hidden_size, d_in_p, hid_p)
    w2, b2 = linear(ks[2], ks[3], hidden_size, hidden_size, hid_p, hid_p)
    w3, b3 = linear(ks[4], ks[5], hidden_size, num_classes, hid_p, cls_p)
    return (w1, b1, w2, b2, w3, b3)


def ref_forward(x, params, num_classes):
    """Pure-JAX reference with identical bf16-fed / f32-accumulated matmuls."""
    w1, b1, w2, b2, w3, b3 = params
    d_in = x.shape[1]
    h = jnp.maximum(jnp.dot(x.astype(jnp.bfloat16), w1[:d_in],
                            preferred_element_type=jnp.float32) + b1, 0.0)
    h = jnp.maximum(jnp.dot(h.astype(jnp.bfloat16), w2,
                            preferred_element_type=jnp.float32) + b2, 0.0)
    h = jnp.maximum(jnp.dot(h.astype(jnp.bfloat16), w3,
                            preferred_element_type=jnp.float32) + b3, 0.0)
    return h[:, :num_classes]


if __name__ == "__main__":
    # input_size aligned to 128 -> exercises the "stream x f32 directly" fast
    # path; num_classes=10 -> exercises lane padding + output slice; batch=256
    # with tile_b=128 -> grid of 2 parallel tiles (both v7x TensorCores).
    input_size, hidden_size, num_classes = 128, 128, 10
    batch = 256

    key = jax.random.PRNGKey(0)
    kx, kp = jax.random.split(key)
    x = jax.random.normal(kx, (batch, input_size), dtype=jnp.float32)
    params = init_params(kp, input_size, hidden_size, num_classes)

    fwd = jax.jit(lambda xx: neural_net_forward(xx, params, num_classes))
    out = jax.block_until_ready(fwd(x))

    ref = ref_forward(x, params, num_classes)
    assert out.shape == (batch, num_classes)
    max_err = float(jnp.max(jnp.abs(out - ref)))
    assert jnp.allclose(out, ref, atol=2e-2, rtol=2e-2), max_err

    print("KERNEL_OK")
</pallas_src>

<mosaic_0001>
module attributes {stable_mosaic.version = 11 : i64} {
  func.func @mlp_kernel(%arg0: i32, %arg1: memref<128x128xf32, #tpu.memory_space<vmem>>, %arg2: memref<128x128xbf16, #tpu.memory_space<vmem>>, %arg3: memref<1x128xf32, #tpu.memory_space<vmem>>, %arg4: memref<128x128xbf16, #tpu.memory_space<vmem>>, %arg5: memref<1x128xf32, #tpu.memory_space<vmem>>, %arg6: memref<128x128xbf16, #tpu.memory_space<vmem>>, %arg7: memref<1x128xf32, #tpu.memory_space<vmem>>, %arg8: memref<128x128xbf16, #tpu.memory_space<vmem>>) attributes {dimension_semantics = [#tpu.dimension_semantics<parallel>], iteration_bounds = array<i64: 2>, scalar_prefetch = 0 : i64, scratch_operands = 0 : i64, tpu.core_type = #tpu.core_type<tc>, window_params = [{transform_indices = @transform_0, window_bounds = array<i64: 128, 128>}, {pipeline_mode = #tpu.pipeline_mode<synchronous>, transform_indices = @transform_1, window_bounds = array<i64: 128, 128>}, {pipeline_mode = #tpu.pipeline_mode<synchronous>, transform_indices = @transform_2, window_bounds = array<i64: 1, 128>}, {pipeline_mode = #tpu.pipeline_mode<synchronous>, transform_indices = @transform_3, window_bounds = array<i64: 128, 128>}, {pipeline_mode = #tpu.pipeline_mode<synchronous>, transform_indices = @transform_4, window_bounds = array<i64: 1, 128>}, {pipeline_mode = #tpu.pipeline_mode<synchronous>, transform_indices = @transform_5, window_bounds = array<i64: 128, 128>}, {pipeline_mode = #tpu.pipeline_mode<synchronous>, transform_indices = @transform_6, window_bounds = array<i64: 1, 128>}, {transform_indices = @transform_7, window_bounds = array<i64: 128, 128>}]} {
    %c0 = arith.constant 0 : index
    %c0_0 = arith.constant 0 : index
    %0 = vector.load %arg1[%c0, %c0_0] : memref<128x128xf32, #tpu.memory_space<vmem>>, vector<128x128xf32>
    %1 = arith.truncf %0 : vector<128x128xf32> to vector<128x128xbf16>
    %c0_1 = arith.constant 0 : index
    %c0_2 = arith.constant 0 : index
    %2 = vector.load %arg2[%c0_1, %c0_2] : memref<128x128xbf16, #tpu.memory_space<vmem>>, vector<128x128xbf16>
    %cst = arith.constant dense<0.000000e+00> : vector<128x128xf32>
    %3 = tpu.matmul %1, %2, %cst {dimension_numbers = #tpu.dot_dimension_numbers<[1], [0], [0], [1], [0, 0, 1, 1], [], []>} : vector<128x128xbf16>, vector<128x128xbf16>, vector<128x128xf32> -> vector<128x128xf32>
    %c0_3 = arith.constant 0 : index
    %c0_4 = arith.constant 0 : index
    %4 = vector.load %arg3[%c0_3, %c0_4] : memref<1x128xf32, #tpu.memory_space<vmem>>, vector<1x128xf32>
    %5 = vector.broadcast %4 : vector<1x128xf32> to vector<128x128xf32>
    %6 = arith.addf %3, %5 : vector<128x128xf32>
    %cst_5 = arith.constant 0.000000e+00 : f32
    %7 = vector.broadcast %cst_5 : f32 to vector<128x128xf32>
    %8 = arith.maximumf %6, %7 : vector<128x128xf32>
    %9 = arith.truncf %8 : vector<128x128xf32> to vector<128x128xbf16>
    %c0_6 = arith.constant 0 : index
    %c0_7 = arith.constant 0 : index
    %10 = vector.load %arg4[%c0_6, %c0_7] : memref<128x128xbf16, #tpu.memory_space<vmem>>, vector<128x128xbf16>
    %cst_8 = arith.constant dense<0.000000e+00> : vector<128x128xf32>
    %11 = tpu.matmul %9, %10, %cst_8 {dimension_numbers = #tpu.dot_dimension_numbers<[1], [0], [0], [1], [0, 0, 1, 1], [], []>} : vector<128x128xbf16>, vector<128x128xbf16>, vector<128x128xf32> -> vector<128x128xf32>
    %c0_9 = arith.constant 0 : index
    %c0_10 = arith.constant 0 : index
    %12 = vector.load %arg5[%c0_9, %c0_10] : memref<1x128xf32, #tpu.memory_space<vmem>>, vector<1x128xf32>
    %13 = vector.broadcast %12 : vector<1x128xf32> to vector<128x128xf32>
    %14 = arith.addf %11, %13 : vector<128x128xf32>
    %cst_11 = arith.constant 0.000000e+00 : f32
    %15 = vector.broadcast %cst_11 : f32 to vector<128x128xf32>
    %16 = arith.maximumf %14, %15 : vector<128x128xf32>
    %17 = arith.truncf %16 : vector<128x128xf32> to vector<128x128xbf16>
    %c0_12 = arith.constant 0 : index
    %c0_13 = arith.constant 0 : index
    %18 = vector.load %arg6[%c0_12, %c0_13] : memref<128x128xbf16, #tpu.memory_space<vmem>>, vector<128x128xbf16>
    %cst_14 = arith.constant dense<0.000000e+00> : vector<128x128xf32>
    %19 = tpu.matmul %17, %18, %cst_14 {dimension_numbers = #tpu.dot_dimension_numbers<[1], [0], [0], [1], [0, 0, 1, 1], [], []>} : vector<128x128xbf16>, vector<128x128xbf16>, vector<128x128xf32> -> vector<128x128xf32>
    %c0_15 = arith.constant 0 : index
    %c0_16 = arith.constant 0 : index
    %20 = vector.load %arg7[%c0_15, %c0_16] : memref<1x128xf32, #tpu.memory_space<vmem>>, vector<1x128xf32>
    %21 = vector.broadcast %20 : vector<1x128xf32> to vector<128x128xf32>
    %22 = arith.addf %19, %21 : vector<128x128xf32>
    %cst_17 = arith.constant 0.000000e+00 : f32
    %23 = vector.broadcast %cst_17 : f32 to vector<128x128xf32>
    %24 = arith.maximumf %22, %23 : vector<128x128xf32>
    %25 = arith.truncf %24 : vector<128x128xf32> to vector<128x128xbf16>
    %c0_18 = arith.constant 0 : index
    %c0_19 = arith.constant 0 : index
    %26 = vector.load %arg8[%c0_18, %c0_19] : memref<128x128xbf16, #tpu.memory_space<vmem>>, vector<128x128xbf16>
    tpu.vector_store %arg8[%c0_18, %c0_19], %25 {strides = array<i32>} : memref<128x128xbf16, #tpu.memory_space<vmem>>, vector<128x128xbf16>,
    return
  }
  func.func @transform_0(%arg0: i32) -> (i32, i32) {
    %c0_i32 = arith.constant 0 : i32
    %c0_i32_0 = arith.constant 0 : i32
    return %arg0, %c0_i32 : i32, i32
  }
  func.func @transform_1(%arg0: i32) -> (i32, i32) {
    %c0_i32 = arith.constant 0 : i32
    %c0_i32_0 = arith.constant 0 : i32
    %c0_i32_1 = arith.constant 0 : i32
    return %c0_i32, %c0_i32_0 : i32, i32
  }
  func.func @transform_2(%arg0: i32) -> (i32, i32) {
    %c0_i32 = arith.constant 0 : i32
    %c0_i32_0 = arith.constant 0 : i32
    %c0_i32_1 = arith.constant 0 : i32
    return %c0_i32, %c0_i32_0 : i32, i32
  }
  func.func @transform_3(%arg0: i32) -> (i32, i32) {
    %c0_i32 = arith.constant 0 : i32
    %c0_i32_0 = arith.constant 0 : i32
    %c0_i32_1 = arith.constant 0 : i32
    return %c0_i32, %c0_i32_0 : i32, i32
  }
  func.func @transform_4(%arg0: i32) -> (i32, i32) {
    %c0_i32 = arith.constant 0 : i32
    %c0_i32_0 = arith.constant 0 : i32
    %c0_i32_1 = arith.constant 0 : i32
    return %c0_i32, %c0_i32_0 : i32, i32
  }
  func.func @transform_5(%arg0: i32) -> (i32, i32) {
    %c0_i32 = arith.constant 0 : i32
    %c0_i32_0 = arith.constant 0 : i32
    %c0_i32_1 = arith.constant 0 : i32
    return %c0_i32, %c0_i32_0 : i32, i32
  }
  func.func @transform_6(%arg0: i32) -> (i32, i32) {
    %c0_i32 = arith.constant 0 : i32
    %c0_i32_0 = arith.constant 0 : i32
    %c0_i32_1 = arith.constant 0 : i32
    return %c0_i32, %c0_i32_0 : i32, i32
  }
  func.func @transform_7(%arg0: i32) -> (i32, i32) {
    %c0_i32 = arith.constant 0 : i32
    %c0_i32_0 = arith.constant 0 : i32
    return %arg0, %c0_i32 : i32, i32
  }
}

</mosaic_0001>

<bundles_post_ra>
// kernel: _lambda_.1
= control target key start
LH: loop header
LB: loop body
LE: loop exit
PB: predicated region body
PF: predicated region fallthrough
CT: control target
= control target key end

     0   :  { %12 = vsyncpa [#allocation3], 0  ;;  %s1668_s0 = inlined_call_operand.hbm [shape: f32[256,128], index: 0, kind: input, shape index: {}]   ;;  %s1669_s1 = inlined_call_operand.hbm [shape: bf16[128,128], index: 1, kind: input, shape index: {}]   ;;  %s1670_s2 = inlined_call_operand.hbm [shape: f32[1,128], index: 2, kind: input, shape index: {}]   ;;  %s1671_s3 = inlined_call_operand.hbm [shape: bf16[128,128], index: 3, kind: input, shape index: {}]   ;;  %s1672_s4 = inlined_call_operand.vmem [shape: f32[1,128], index: 4, kind: input, shape index: {}]   ;;  %s1673_s5 = inlined_call_operand.hbm [shape: bf16[128,128], index: 5, kind: input, shape index: {}]   ;;  %s1674_s6 = inlined_call_operand.vmem [shape: f32[1,128], index: 6, kind: input, shape index: {}]   ;;  %s1675_s7 = inlined_call_operand.vmem [shape: bf16[256,128], index: 7, kind: output, shape index: {}]  }
   0x1   :  { %14 = vsyncpa [#allocation3 + $0x1], 0 }
   0x2   :  { %15 = vsyncpa [#allocation5], 0 }
   0x3   :  { %16 = vsyncpa [#allocation8], 0  ;;  %s1485_s24 = smov 0   ;;  %s1487_s25 = smov 0  }
   0x4   :  { %s1489_s26 = smov 0   ;;  %s1491_s27 = smov 0  }
   0x5 LB: > { %s1676_s28 = sadd.s32 4294967295, %s1435_s27   ;;  %p42_p0 = scmp.ne.s32.totalorder %s1427_s25, %s1423_s24  ;;  %s1435_s27 = sphi %s1491_s27, %s1686_s27   ;;  %s1431_s26 = sphi %s1489_s26, %s1685_s26   ;;  %s1427_s25 = sphi %s1487_s25, %s1684_s25   ;;  %s1423_s24 = sphi %s1485_s24, %s1683_s24  }
   0x6   : > { %p1507_p1 = scmp.eq.s32.totalorder %s1676_s28, 0  ;;  %p945_p2 = scmp.ge.s32.totalorder %s1435_s27, 1 }
   0x7   : > { %p205_p3 = scmp.lt.s32.totalorder %s1435_s27, 3  ;;  %s216_s10 = sshll.u32 %s1669_s1, 4  ;;  %s217_s10 = int_to_ptr.hbm [resolvable:$true] %s216_s10 }
   0x8   : > { %p1515_p4 = por %p1507_p1, %p42_p0  ;;  %s1437_s12 = smov [#allocation4]  }
   0x9   : > { %p1522_p5 = pnand %p945_p2, %p205_p3  ;;  %s218_s13 = sshll.u32 %s1437_s12, 4  ;;  %s219_s13 = int_to_ptr.vmem [resolvable:$true] %s218_s13 }
   0xa   : > { %s242_s17 = sshll.u32 %s1671_s3, 4  ;;  %s1438_s18 = smov 64   ;;  %s243_s17 = int_to_ptr.hbm [resolvable:$true] %s242_s17 }
   0xb   : > { %p1174_p6 = pneg %p1522_p5  ;;  %s1439_s19 = smov 4  }
   0xc   : > { %s1440_s20 = smov [#allocation7]   ;;  %s231_s24 = sshll.u32 %s1670_s2, 4  ;;  %s232_s24 = int_to_ptr.hbm [resolvable:$true] %s231_s24 }
   0xd   : > { %p1530_p7 = pnand %p1174_p6, %p1507_p1  ;;  %s244_s21 = sshll.u32 %s1440_s20, 4  ;;  %s245_s21 = int_to_ptr.vmem [resolvable:$true] %s244_s21 }
   0xe   : > { %s1441_s12 = smov [#allocation6]   ;;  %s1442_s15 = smov [#allocation9]  }
   0xf   : > { %1177 = dma.hbm_to_vmem [thread:$0]  (!%p1530_p7), %s217_s10, 1024, %s219_s13, [#allocation5], %s1438_s18, %s1438_s18, %s1439_s19  }
  0x10   : > { %1183 = dma.hbm_to_vmem [thread:$0]  (!%p1530_p7), %s243_s17, 1024, %s245_s21, [#allocation8], %s1438_s18, %s1438_s18, %s1439_s19  }
  0x11   : > { %s259_s10 = sshll.u32 %s1673_s5, 4  ;;  %s233_s13 = sshll.u32 %s1441_s12, 4  ;;  %s260_s10 = int_to_ptr.hbm [resolvable:$true] %s259_s10  ;;  %s234_s13 = int_to_ptr.vmem [resolvable:$true] %s233_s13 }
  0x12   : > { %1180 = dma.hbm_to_vmem [thread:$0]  (!%p1530_p7), %s232_s24, 16, %s234_s13, [#allocation5]  }
  0x13   : > { %s261_s16 = sshll.u32 %s1442_s15, 4  ;;  %s1552_s17 = sadd.s32 1, %s1435_s27   ;;  %s262_s16 = int_to_ptr.vmem [resolvable:$true] %s261_s16 }
  0x14   : > { %1186 = dma.hbm_to_vmem [thread:$0]  (!%p1530_p7), %s260_s10, 1024, %s262_s16, [#allocation8], %s1438_s18, %s1438_s18, %s1439_s19  }
  0x15   : > { %s29_s20 = sadd.s32 1, %s1431_s26  ;;  %s26_s21 = ssub.s32 %s1435_s27, %s1552_s17 }
  0x16   : > { %p36_p8 = scmp.ne.s32.totalorder %s1431_s26, %s1427_s25  ;;  %p27_p9 = scmp.eq.s32.totalorder %s26_s21, 0 }
  0x17   : > { %p37_p10 = scmp.eq.s32.totalorder %s1435_s27, 0  ;;  %p1195_p11 = scmp.lt.s32.totalorder %s1435_s27, 2 }
  0x18   : > { %s278_s22 = sand.u32 1, %s1431_s26   ;;  %s1060_s8 = sshll.u32 %s1435_s27, 7 }
  0x19   : > { %s1563_s23 = scalar_select %p27_p9, %s1431_s26, %s29_s20  }
  0x1a   : > { %p38_p12 = por %p37_p10, %p36_p8  ;;  %s951_s24 = sshll.u32 %s278_s22, 7 }
  0x1b   : > { %s287_s14 = scalar_lea.hbm %s1668_s0, %s1060_s8  ;;  %s282_s19 = scalar_lea.vmem [#allocation2], %s951_s24 }
  0x1c   : > { %s288_s18 = sshll.u32 %s287_s14, 4  ;;  %s290_s10 = sshll.u32 %s282_s19, 4  ;;  %s289_s18 = int_to_ptr.hbm [resolvable:$true] %s288_s18  ;;  %s291_s10 = int_to_ptr.vmem [resolvable:$true] %s290_s10 }
  0x1d   : > { %p1569_p13 = pnand %p1195_p11, %p38_p12  ;;  %s279_s15 = scalar_lea.sflag [#allocation3], %s278_s22 }
  0x1e   : > { %s1363_s16 = sshra.s32 %s289_s18, 4  ;;  %s1370_s24 = scalar_lea.hbm %s1668_s0, 256  ;;  %s1364_s16 = int_to_ptr.hbm [resolvable:$true] %s1363_s16 }
  0x1f   : > { %s1365_s20 = scalar_lea.hbm %s1364_s16, 128  ;;  %p1367_p2 = pneg %p1569_p13 }
  0x20   : > { %p1366_p0 = scmp.ne.s32.totalorder %s1364_s16, %s1365_s20  ;;  %p1371_p7 = scmp.lt.s32.totalorder %s1364_s16, %s1668_s0 }
  0x21   : > { %p1372_p8 = scmp.lt.s32.totalorder %s1370_s24, %s1365_s20 }
  0x22   : > { %p1368_p3 = pnand %p1367_p2, %p1366_p0 }
  0x23   : > { %p1373_p9 = por %p1372_p8, %p1371_p7 }
  0x24   : > { %p1369_p6 = pneg %p1368_p3 }
  0x26   : > { %p1374_p10 = pnand %p1373_p9, %p1369_p6 }
  0x28   : > { %1377 = shalt.err (!%p1374_p10)
}
  0x29   : > { %s1443_s22 = smov 128   ;;  %s1444_s14 = smov 8  }
  0x2a   : > { %1190 = dma.hbm_to_vmem [thread:$0]  (!%p1569_p13), %s289_s18, 2048, %s291_s10, %s279_s15, %s1443_s22, %s1443_s22, %s1444_s14  }
  0x2b   : > { %302 = sbr.rel (%p1522_p5) target bundleno = 592 (0x250), region = 48  ;;  %s304_s19 = sand.u32 (!%p1522_p5), 1, %s1427_s25  }
  0x2c   : > { %s955_s21 = sshll.u32 (!%p1522_p5), %s304_s19, 7  ;;  %s305_s8 = scalar_lea.sflag (!%p1522_p5), [#allocation3], %s304_s19 }
  0x2d   : > { %s1586_s28 = scalar_lea.vmem (!%p1522_p5), [#allocation2], %s955_s21 }
  0x30   : > { %1410 = dma.done.wait (%p1515_p4), %s305_s8, 2048  }
  0x31   : > { %1412 = vsyncadd (%p1515_p4), %s305_s8, 4294965248 }
  0x32   : > { %1414 = dma.done.wait (%p1507_p1), [#allocation5], 1040  }
  0x33   : > { %1416 = vsyncadd (%p1507_p1), [#allocation5], 4294966256 }
  0x34   : > { %1418 = dma.done.wait (%p1507_p1), [#allocation8], 2048  }
  0x35   : > { %1420 = vsyncadd (%p1507_p1), [#allocation8], 4294965248  ;;  %v1068_v0 = vld [vmem:[#allocation4 + $0x38] sm:$0xff]  ;;  %v1067_v1 = vld [vmem:[#allocation4 + $0x30] sm:$0xff]  ;;  %s1682_s30 = sadd.s32 4294967295, %s1435_s27  }
  0x36   : > { %459 = vmatpush.bf16.msra.mxu0 %v1068_v0  ;;  %1132 = vmatpush.bf16.msra.mxu3 %v1068_v0  ;;  %v1066_v2 = vld [vmem:[#allocation4 + $0x28] sm:$0xff]  ;;  %v1065_v3 = vld [vmem:[#allocation4 + $0x20] sm:$0xff]  ;;  %v1064_v4 = vld [vmem:[#allocation4 + $0x18] sm:$0xff]  ;;  %s960_s11 = sshll.u32 %s1682_s30, 4 }
  0x37   : > { %v1063_v5 = vld [vmem:[#allocation4 + $0x10] sm:$0xff]  ;;  %v1062_v6 = vld [vmem:[#allocation4 + $0x8] sm:$0xff]  ;;  %v1061_v7 = vld [vmem:[#allocation4] sm:$0xff]  ;;  %p362_p1 = scmp.lt.s32.totalorder %s960_s11, 31 }
  0x38   : > { %v367_v8 = vld [vmem:[%s1586_s28] sm:$0xff]  ;;  %v368_v9 = vld [vmem:[%s1586_s28 + $0x8] sm:$0xff]  ;;  %v369_v14 = vld [vmem:[%s1586_s28 + $0x10] sm:$0xff] }
  0x39   : > { %v379_v10 = vld [vmem:[%s1586_s28 + $0x60] sm:$0xff]  ;;  %v380_v11 = vld [vmem:[%s1586_s28 + $0x68] sm:$0xff]  ;;  %v383_v12 = vpack.c.bf16 %v368_v9, %v367_v8  ;;  %v370_v15 = vld [vmem:[%s1586_s28 + $0x18] sm:$0xff]  ;;  %s1688_s11 = smov (!%p362_p1, %s960_s11), 31 }
  0x3a   : > { %460 = vmatpush.bf16.msra.mxu0 %v1067_v1  ;;  %1133 = vmatpush.bf16.msra.mxu3 %v1067_v1  ;;  %v389_v13 = vpack.c.bf16 %v380_v11, %v379_v10  ;;  %v381_v16 = vld [vmem:[%s1586_s28 + $0x70] sm:$0xff]  ;;  %v382_v17 = vld [vmem:[%s1586_s28 + $0x78] sm:$0xff]  ;;  %v384_v18 = vpack.c.bf16 %v370_v15, %v369_v14  ;;  %v371_v20 = vld [vmem:[%s1586_s28 + $0x20] sm:$0xff]  ;;  %s961_s13 = sshll.u32 %s1688_s11, 2 }
  0x3b   : > { %v390_v19 = vpack.c.bf16 %v382_v17, %v381_v16  ;;  %v372_v21 = vld [vmem:[%s1586_s28 + $0x28] sm:$0xff]  ;;  %v373_v23 = vld [vmem:[%s1586_s28 + $0x30] sm:$0xff]  ;;  %v374_v24 = vld [vmem:[%s1586_s28 + $0x38] sm:$0xff]  ;;  %s1645_s20 = scalar_lea.vmem %s1675_s7, %s961_s13 }
  0x3c   : > { %v385_v22 = vpack.c.bf16 %v372_v21, %v371_v20  ;;  %v386_v25 = vpack.c.bf16 %v374_v24, %v373_v23  ;;  %v1076_v26 = vld [vmem:[#allocation7 + $0x38] sm:$0xff]  ;;  %v1075_v27 = vld [vmem:[#allocation7 + $0x30] sm:$0xff]  ;;  %v1074_v28 = vld [vmem:[#allocation7 + $0x28] sm:$0xff] }
  0x3d   : > { %600 = vmatpush.bf16.msra.mxu1 %v1076_v26  ;;  %v375_v29 = vld [vmem:[%s1586_s28 + $0x40] sm:$0xff]  ;;  %v376_v30 = vld [vmem:[%s1586_s28 + $0x48] sm:$0xff]  ;;  %v377_v33 = vld [vmem:[%s1586_s28 + $0x50] sm:$0xff] }
  0x3e   : > { %461 = vmatpush.bf16.msra.mxu0 %v1066_v2  ;;  %1134 = vmatpush.bf16.msra.mxu3 %v1066_v2  ;;  %v1073_v31 = vld [vmem:[#allocation7 + $0x20] sm:$0xff]  ;;  %v387_v32 = vpack.c.bf16 %v376_v30, %v375_v29  ;;  %v378_v34 = vld [vmem:[%s1586_s28 + $0x58] sm:$0xff]  ;;  %v1070_v38 = vld [vmem:[#allocation7 + $0x8] sm:$0xff] }
  0x3f   : > { %v388_v35 = vpack.c.bf16 %v378_v34, %v377_v33  ;;  %v1072_v36 = vld [vmem:[#allocation7 + $0x18] sm:$0xff]  ;;  %v1071_v37 = vld [vmem:[#allocation7 + $0x10] sm:$0xff]  ;;  %v1069_v39 = vld [vmem:[#allocation7] sm:$0xff] }
  0x40   : > { %v1616_v41 = vld [vmem:[#allocation6] ss:$0 sm:$0xff]  ;;  %v1083_v21 = vld [vmem:[#allocation9 + $0x30] sm:$0xff] }
  0x41   : > { %601 = vmatpush.bf16.msra.mxu1 %v1075_v27 }
  0x42   : > { %462 = vmatpush.bf16.msra.mxu0 %v1065_v3  ;;  %1135 = vmatpush.bf16.msra.mxu3 %v1065_v3 }
  0x45   : > { %602 = vmatpush.bf16.msra.mxu1 %v1074_v28 }
  0x46   : > { %463 = vmatpush.bf16.msra.mxu0 %v1064_v4  ;;  %1136 = vmatpush.bf16.msra.mxu3 %v1064_v4 }
  0x49   : > { %603 = vmatpush.bf16.msra.mxu1 %v1073_v31 }
  0x4a   : > { %464 = vmatpush.bf16.msra.mxu0 %v1063_v5  ;;  %1137 = vmatpush.bf16.msra.mxu3 %v1063_v5 }
  0x4d   : > { %604 = vmatpush.bf16.msra.mxu1 %v1072_v36 }
  0x4e   : > { %465 = vmatpush.bf16.msra.mxu0 %v1062_v6  ;;  %1138 = vmatpush.bf16.msra.mxu3 %v1062_v6 }
  0x51   : > { %605 = vmatpush.bf16.msra.mxu1 %v1071_v37 }
  0x52   : > { %466 = vmatpush.bf16.msra.mxu0 %v1061_v7  ;;  %1139 = vmatpush.bf16.msra.mxu3 %v1061_v7 }
  0x55   : > { %467 = vmatmul.bf16.vlgmr.msra.gmra.mxu0 %v383_v12  ;;  %497 = vmatmul.bf16.vlgmr.msra.gmra.mxu3 %v389_v13 }
  0x56   : > { %1140 = vmatpush.bf16.msrb.mxu3 %v1076_v26  ;;  %606 = vmatpush.bf16.msra.mxu1 %v1070_v38  ;;  %v1081_v26 = vld [vmem:[#allocation9 + $0x20] sm:$0xff] }
  0x5a   : > { %1141 = vmatpush.bf16.msrb.mxu3 %v1075_v27  ;;  %607 = vmatpush.bf16.msra.mxu1 %v1069_v39 }
  0x5e   : > { %1142 = vmatpush.bf16.msrb.mxu3 %v1074_v28 }
  0x62   : > { %1143 = vmatpush.bf16.msrb.mxu3 %v1073_v31 }
  0x65   : > { %472 = vmatmul.bf16.gmra.mxu0 %v384_v18  ;;  %502 = vmatmul.bf16.gmra.mxu3 %v390_v19  ;;  %v1084_v19 = vld [vmem:[#allocation9 + $0x38] sm:$0xff] }
  0x66   : > { %1144 = vmatpush.bf16.msrb.mxu3 %v1072_v36  ;;  %741 = vmatpush.bf16.msra.mxu2 %v1084_v19 }
  0x6a   : > { %1145 = vmatpush.bf16.msrb.mxu3 %v1071_v37  ;;  %742 = vmatpush.bf16.msra.mxu2 %v1083_v21  ;;  %v1080_v37 = vld [vmem:[#allocation9 + $0x18] sm:$0xff] }
  0x6e   : > { %1146 = vmatpush.bf16.msrb.mxu3 %v1070_v38  ;;  %v1079_v38 = vld [vmem:[#allocation9 + $0x10] sm:$0xff] }
  0x72   : > { %1147 = vmatpush.bf16.msrb.mxu3 %v1069_v39  ;;  %v1078_v39 = vld [vmem:[#allocation9 + $0x8] sm:$0xff] }
  0x75   : > { %477 = vmatmul.bf16.gmra.mxu0 %v385_v22  ;;  %v1082_v22 = vld [vmem:[#allocation9 + $0x28] sm:$0xff] }
  0x76   : > { %1148 = vmatpush.bf16.msra.mxu3 %v1084_v19  ;;  %743 = vmatpush.bf16.msra.mxu2 %v1082_v22 }
  0x7a   : > { %1149 = vmatpush.bf16.msra.mxu3 %v1083_v21  ;;  %744 = vmatpush.bf16.msra.mxu2 %v1081_v26 }
  0x7e   : > { %1150 = vmatpush.bf16.msra.mxu3 %v1082_v22  ;;  %745 = vmatpush.bf16.msra.mxu2 %v1080_v37 }
  0x82   : > { %1151 = vmatpush.bf16.msra.mxu3 %v1081_v26  ;;  %746 = vmatpush.bf16.msra.mxu2 %v1079_v38 }
  0x85   : > { %482 = vmatmul.bf16.gmra.mxu0 %v386_v25 }
  0x86   : > { %1152 = vmatpush.bf16.msra.mxu3 %v1080_v37  ;;  %747 = vmatpush.bf16.msra.mxu2 %v1078_v39 }
  0x8a   : > { %1153 = vmatpush.bf16.msra.mxu3 %v1079_v38 }
  0x8e   : > { %1154 = vmatpush.bf16.msra.mxu3 %v1078_v39 }
  0x95   : > { %487 = vmatmul.bf16.gmra.mxu0 %v387_v32 }
  0xa5   : > { %492 = vmatmul.bf16.gmra.mxu0 %v388_v35 }
  0xd2   : > { %v468_v40 = vpop.f32.mrf.mxu0 }
  0xd3   : > { %v469_v43 = vadd.f32 %v1616_v41, %v468_v40  ;;  %v1077_v40 = vld [vmem:[#allocation9] sm:$0xff] }
  0xd4   : > { %748 = vmatpush.bf16.msra.mxu2 %v1077_v40  ;;  %1155 = vmatpush.bf16.msra.mxu3 %v1077_v40 }
  0xd5   : > { %v508_v46 = vmax.f32 %v469_v43, 0.0 }
  0xd8   : > { %v498_v42 = vpop.f32.mrf.mxu3 }
  0xd9   : > { %v499_v48 = vadd.f32 %v1616_v41, %v498_v42 }
  0xda   : > { %v470_v44 = vpop.f32.mrf.mxu0 }
  0xdb   : > { %v471_v45 = vadd.f32 %v1616_v41, %v470_v44  ;;  %v520_v51 = vmax.f32 %v499_v48, 0.0 }
  0xdd   : > { %v509_v47 = vmax.f32 %v471_v45, 0.0 }
  0xdf   : > { %v524_v49 = vpack.c.bf16 %v509_v47, %v508_v46 }
  0xe0   : > { %v500_v50 = vpop.f32.mrf.mxu3 }
  0xe1   : > { %608 = vmatmul.bf16.vlgmr.msra.gmra.mxu1 %v524_v49  ;;  %v501_v52 = vadd.f32 %v1616_v41, %v500_v50 }
  0xe2   : > { %v473_v53 = vpop.f32.mrf.mxu0 }
  0xe3   : > { %v521_v54 = vmax.f32 %v501_v52, 0.0  ;;  %v474_v57 = vadd.f32 %v1616_v41, %v473_v53 }
  0xe5   : > { %v530_v55 = vpack.c.bf16 %v521_v54, %v520_v51  ;;  %v510_v60 = vmax.f32 %v474_v57, 0.0 }
  0xe7   : > { %638 = vmatmul.bf16.vlgmr.msrb.gmra.mxu3 %v530_v55 }
  0xe8   : > { %v503_v56 = vpop.f32.mrf.mxu3 }
  0xe9   : > { %v504_v62 = vadd.f32 %v1616_v41, %v503_v56 }
  0xea   : > { %v475_v58 = vpop.f32.mrf.mxu0 }
  0xeb   : > { %v476_v59 = vadd.f32 %v1616_v41, %v475_v58  ;;  %v522_v1 = vmax.f32 %v504_v62, 0.0 }
  0xed   : > { %v511_v61 = vmax.f32 %v476_v59, 0.0 }
  0xef   : > { %v525_v63 = vpack.c.bf16 %v511_v61, %v510_v60 }
  0xf0   : > { %v505_v0 = vpop.f32.mrf.mxu3 }
  0xf1   : > { %613 = vmatmul.bf16.gmra.mxu1 %v525_v63  ;;  %v506_v2 = vadd.f32 %v1616_v41, %v505_v0 }
  0xf2   : > { %v478_v3 = vpop.f32.mrf.mxu0 }
  0xf3   : > { %v523_v4 = vmax.f32 %v506_v2, 0.0  ;;  %v479_v6 = vadd.f32 %v1616_v41, %v478_v3 }
  0xf5   : > { %v531_v5 = vpack.c.bf16 %v523_v4, %v522_v1  ;;  %v512_v9 = vmax.f32 %v479_v6, 0.0 }
  0xf7   : > { %643 = vmatmul.bf16.gmra.mxu3 %v531_v5 }
  0xfa   : > { %v480_v7 = vpop.f32.mrf.mxu0 }
  0xfb   : > { %v481_v8 = vadd.f32 %v1616_v41, %v480_v7 }
  0xfd   : > { %v513_v10 = vmax.f32 %v481_v8, 0.0 }
  0xff   : > { %v526_v11 = vpack.c.bf16 %v513_v10, %v512_v9 }
 0x101   : > { %618 = vmatmul.bf16.gmra.mxu1 %v526_v11 }
 0x102   : > { %v483_v12 = vpop.f32.mrf.mxu0 }
 0x103   : > { %v484_v13 = vadd.f32 %v1616_v41, %v483_v12 }
 0x105   : > { %v514_v16 = vmax.f32 %v484_v13, 0.0 }
 0x10a   : > { %v485_v14 = vpop.f32.mrf.mxu0 }
 0x10b   : > { %v486_v15 = vadd.f32 %v1616_v41, %v485_v14 }
 0x10d   : > { %v515_v17 = vmax.f32 %v486_v15, 0.0 }
 0x10f   : > { %v527_v18 = vpack.c.bf16 %v515_v17, %v514_v16 }
 0x111   : > { %623 = vmatmul.bf16.gmra.mxu1 %v527_v18 }
 0x112   : > { %v488_v20 = vpop.f32.mrf.mxu0 }
 0x113   : > { %v489_v23 = vadd.f32 %v1616_v41, %v488_v20 }
 0x115   : > { %v516_v27 = vmax.f32 %v489_v23, 0.0 }
 0x11a   : > { %v490_v24 = vpop.f32.mrf.mxu0 }
 0x11b   : > { %v491_v25 = vadd.f32 %v1616_v41, %v490_v24 }
 0x11d   : > { %v517_v28 = vmax.f32 %v491_v25, 0.0 }
 0x11f   : > { %v528_v29 = vpack.c.bf16 %v517_v28, %v516_v27 }
 0x121   : > { %628 = vmatmul.bf16.gmra.mxu1 %v528_v29 }
 0x122   : > { %v493_v30 = vpop.f32.mrf.mxu0 }
 0x123   : > { %v494_v31 = vadd.f32 %v1616_v41, %v493_v30 }
 0x125   : > { %v518_v34 = vmax.f32 %v494_v31, 0.0 }
 0x12a   : > { %v495_v32 = vpop.f32.mrf.mxu0 }
 0x12b   : > { %v496_v33 = vadd.f32 %v1616_v41, %v495_v32  ;;  %v1241_v41 = vld [vmem:[%s1672_s4] ss:$0 sm:$0xff] }
 0x12d   : > { %v519_v35 = vmax.f32 %v496_v33, 0.0 }
 0x12f   : > { %v529_v36 = vpack.c.bf16 %v519_v35, %v518_v34  ;;  %v1242_v35 = vld [vmem:[%s1674_s6] ss:$0 sm:$0xff] }
 0x131   : > { %633 = vmatmul.bf16.gmra.mxu1 %v529_v36 }
 0x15e   : > { %v609_v42 = vpop.f32.mrf.mxu1 }
 0x15f   : > { %v610_v43 = vadd.f32 %v1241_v41, %v609_v42 }
 0x161   : > { %v649_v46 = vmax.f32 %v610_v43, 0.0 }
 0x166   : > { %v611_v44 = vpop.f32.mrf.mxu1 }
 0x167   : > { %v612_v45 = vadd.f32 %v1241_v41, %v611_v44 }
 0x169   : > { %v650_v47 = vmax.f32 %v612_v45, 0.0 }
 0x16a   : > { %v639_v48 = vpop.f32.mrf.mxu3 }
 0x16b   : > { %v665_v49 = vpack.c.bf16 %v650_v47, %v649_v46  ;;  %v640_v51 = vadd.f32 %v1241_v41, %v639_v48 }
 0x16d   : > { %749 = vmatmul.bf16.vlgmr.msra.gmra.mxu2 %v665_v49  ;;  %v661_v53 = vmax.f32 %v640_v51, 0.0 }
 0x16e   : > { %v614_v50 = vpop.f32.mrf.mxu1 }
 0x16f   : > { %v615_v55 = vadd.f32 %v1241_v41, %v614_v50 }
 0x171   : > { %v651_v60 = vmax.f32 %v615_v55, 0.0 }
 0x172   : > { %v641_v52 = vpop.f32.mrf.mxu3 }
 0x173   : > { %v642_v54 = vadd.f32 %v1241_v41, %v641_v52 }
 0x175   : > { %v662_v56 = vmax.f32 %v642_v54, 0.0 }
 0x176   : > { %v616_v57 = vpop.f32.mrf.mxu1 }
 0x177   : > { %v617_v58 = vadd.f32 %v1241_v41, %v616_v57  ;;  %v671_v59 = vpack.c.bf16 %v662_v56, %v661_v53 }
 0x179   : > { %v652_v61 = vmax.f32 %v617_v58, 0.0  ;;  %779 = vmatmul.bf16.vlgmr.msra.gmra.mxu3 %v671_v59 }
 0x17a   : > { %v644_v62 = vpop.f32.mrf.mxu3 }
 0x17b   : > { %v666_v63 = vpack.c.bf16 %v652_v61, %v651_v60  ;;  %v645_v1 = vadd.f32 %v1241_v41, %v644_v62 }
 0x17d   : > { %754 = vmatmul.bf16.gmra.mxu2 %v666_v63  ;;  %v663_v3 = vmax.f32 %v645_v1, 0.0 }
 0x17e   : > { %v619_v0 = vpop.f32.mrf.mxu1 }
 0x17f   : > { %v620_v5 = vadd.f32 %v1241_v41, %v619_v0 }
 0x181   : > { %v653_v10 = vmax.f32 %v620_v5, 0.0 }
 0x182   : > { %v646_v2 = vpop.f32.mrf.mxu3 }
 0x183   : > { %v647_v4 = vadd.f32 %v1241_v41, %v646_v2 }
 0x185   : > { %v664_v6 = vmax.f32 %v647_v4, 0.0 }
 0x186   : > { %v621_v7 = vpop.f32.mrf.mxu1 }
 0x187   : > { %v622_v8 = vadd.f32 %v1241_v41, %v621_v7  ;;  %v672_v9 = vpack.c.bf16 %v664_v6, %v663_v3 }
 0x189   : > { %v654_v11 = vmax.f32 %v622_v8, 0.0  ;;  %784 = vmatmul.bf16.gmra.mxu3 %v672_v9 }
 0x18b   : > { %v667_v12 = vpack.c.bf16 %v654_v11, %v653_v10 }
 0x18d   : > { %759 = vmatmul.bf16.gmra.mxu2 %v667_v12 }
 0x18e   : > { %v624_v13 = vpop.f32.mrf.mxu1 }
 0x18f   : > { %v625_v14 = vadd.f32 %v1241_v41, %v624_v13 }
 0x191   : > { %v655_v17 = vmax.f32 %v625_v14, 0.0 }
 0x196   : > { %v626_v15 = vpop.f32.mrf.mxu1 }
 0x197   : > { %v627_v16 = vadd.f32 %v1241_v41, %v626_v15 }
 0x199   : > { %v656_v18 = vmax.f32 %v627_v16, 0.0 }
 0x19b   : > { %v668_v19 = vpack.c.bf16 %v656_v18, %v655_v17 }
 0x19d   : > { %764 = vmatmul.bf16.gmra.mxu2 %v668_v19 }
 0x19e   : > { %v629_v20 = vpop.f32.mrf.mxu1 }
 0x19f   : > { %v630_v21 = vadd.f32 %v1241_v41, %v629_v20 }
 0x1a1   : > { %v657_v24 = vmax.f32 %v630_v21, 0.0 }
 0x1a6   : > { %v631_v22 = vpop.f32.mrf.mxu1 }
 0x1a7   : > { %v632_v23 = vadd.f32 %v1241_v41, %v631_v22 }
 0x1a9   : > { %v658_v25 = vmax.f32 %v632_v23, 0.0 }
 0x1ab   : > { %v669_v26 = vpack.c.bf16 %v658_v25, %v657_v24 }
 0x1ad   : > { %769 = vmatmul.bf16.gmra.mxu2 %v669_v26 }
 0x1ae   : > { %v634_v27 = vpop.f32.mrf.mxu1 }
 0x1af   : > { %v635_v28 = vadd.f32 %v1241_v41, %v634_v27 }
 0x1b1   : > { %v659_v31 = vmax.f32 %v635_v28, 0.0 }
 0x1b6   : > { %v636_v29 = vpop.f32.mrf.mxu1 }
 0x1b7   : > { %v637_v30 = vadd.f32 %v1241_v41, %v636_v29 }
 0x1b9   : > { %v660_v32 = vmax.f32 %v637_v30, 0.0 }
 0x1bb   : > { %v670_v33 = vpack.c.bf16 %v660_v32, %v659_v31 }
 0x1bd   : > { %774 = vmatmul.bf16.gmra.mxu2 %v670_v33 }
 0x1f0   : > { %v750_v34 = vpop.f32.mrf.mxu2 }
 0x1f1   : > { %v751_v36 = vadd.f32 %v1242_v35, %v750_v34 }
 0x1f3   : > { %v790_v39 = vmax.f32 %v751_v36, 0.0 }
 0x1f8   : > { %v752_v37 = vpop.f32.mrf.mxu2 }
 0x1f9   : > { %v753_v38 = vadd.f32 %v1242_v35, %v752_v37 }
 0x1fb   : > { %v791_v40 = vmax.f32 %v753_v38, 0.0 }
 0x1fc   : > { %v780_v42 = vpop.f32.mrf.mxu3 }
 0x1fd   : > { %v1088_v41 = vpack.c.bf16 %v791_v40, %v790_v39  ;;  %v781_v44 = vadd.f32 %v1242_v35, %v780_v42 }
 0x1ff   : > { %1089 = vst [vmem:[%s1645_s20] sm:$0xff] %v1088_v41   ;;  %v802_v46 = vmax.f32 %v781_v44, 0.0 }
 0x200   : > { %v755_v43 = vpop.f32.mrf.mxu2 }
 0x201   : > { %v756_v48 = vadd.f32 %v1242_v35, %v755_v43 }
 0x203   : > { %v792_v53 = vmax.f32 %v756_v48, 0.0 }
 0x204   : > { %v782_v45 = vpop.f32.mrf.mxu3 }
 0x205   : > { %v783_v47 = vadd.f32 %v1242_v35, %v782_v45 }
 0x207   : > { %v803_v49 = vmax.f32 %v783_v47, 0.0 }
 0x208   : > { %v757_v50 = vpop.f32.mrf.mxu2 }
 0x209   : > { %v758_v51 = vadd.f32 %v1242_v35, %v757_v50  ;;  %v1118_v52 = vpack.c.bf16 %v803_v49, %v802_v46 }
 0x20b   : > { %v793_v54 = vmax.f32 %v758_v51, 0.0  ;;  %1130 = vst [vmem:[%s1645_s20 + $0x30] sm:$0xff] %v1118_v52  }
 0x20c   : > { %v785_v55 = vpop.f32.mrf.mxu3 }
 0x20d   : > { %v1093_v56 = vpack.c.bf16 %v793_v54, %v792_v53  ;;  %v786_v58 = vadd.f32 %v1242_v35, %v785_v55 }
 0x20f   : > { %1125 = vst [vmem:[%s1645_s20 + $0x8] sm:$0xff] %v1093_v56   ;;  %v804_v60 = vmax.f32 %v786_v58, 0.0 }
 0x210   : > { %v760_v57 = vpop.f32.mrf.mxu2 }
 0x211   : > { %v761_v62 = vadd.f32 %v1242_v35, %v760_v57 }
 0x213   : > { %v794_v3 = vmax.f32 %v761_v62, 0.0 }
 0x214   : > { %v787_v59 = vpop.f32.mrf.mxu3 }
 0x215   : > { %v788_v61 = vadd.f32 %v1242_v35, %v787_v59 }
 0x217   : > { %v805_v63 = vmax.f32 %v788_v61, 0.0 }
 0x218   : > { %v762_v0 = vpop.f32.mrf.mxu2 }
 0x219   : > { %v763_v1 = vadd.f32 %v1242_v35, %v762_v0  ;;  %v1123_v2 = vpack.c.bf16 %v805_v63, %v804_v60 }
 0x21b   : > { %v795_v4 = vmax.f32 %v763_v1, 0.0  ;;  %1131 = vst [vmem:[%s1645_s20 + $0x38] sm:$0xff] %v1123_v2  }
 0x21d   : > { %v1098_v5 = vpack.c.bf16 %v795_v4, %v794_v3 }
 0x21f   : > { %1126 = vst [vmem:[%s1645_s20 + $0x10] sm:$0xff] %v1098_v5  }
 0x220   : > { %v765_v6 = vpop.f32.mrf.mxu2 }
 0x221   : > { %v766_v7 = vadd.f32 %v1242_v35, %v765_v6 }
 0x223   : > { %v796_v10 = vmax.f32 %v766_v7, 0.0 }
 0x228   : > { %v767_v8 = vpop.f32.mrf.mxu2 }
 0x229   : > { %v768_v9 = vadd.f32 %v1242_v35, %v767_v8 }
 0x22b   : > { %v797_v11 = vmax.f32 %v768_v9, 0.0 }
 0x22d   : > { %v1103_v12 = vpack.c.bf16 %v797_v11, %v796_v10 }
 0x22f   : > { %1127 = vst [vmem:[%s1645_s20 + $0x18] sm:$0xff] %v1103_v12  }
 0x230   : > { %v770_v13 = vpop.f32.mrf.mxu2 }
 0x231   : > { %v771_v14 = vadd.f32 %v1242_v35, %v770_v13 }
 0x233   : > { %v798_v17 = vmax.f32 %v771_v14, 0.0 }
 0x238   : > { %v772_v15 = vpop.f32.mrf.mxu2 }
 0x239   : > { %v773_v16 = vadd.f32 %v1242_v35, %v772_v15 }
 0x23b   : > { %v799_v18 = vmax.f32 %v773_v16, 0.0 }
 0x23d   : > { %v1108_v19 = vpack.c.bf16 %v799_v18, %v798_v17 }
 0x23f   : > { %1128 = vst [vmem:[%s1645_s20 + $0x20] sm:$0xff] %v1108_v19  }
 0x240   : > { %v775_v20 = vpop.f32.mrf.mxu2 }
 0x241   : > { %v776_v21 = vadd.f32 %v1242_v35, %v775_v20 }
 0x243   : > { %v800_v24 = vmax.f32 %v776_v21, 0.0 }
 0x248   : > { %v777_v22 = vpop.f32.mrf.mxu2 }
 0x249   : > { %v778_v23 = vadd.f32 %v1242_v35, %v777_v22 }
 0x24b   : > { %v801_v25 = vmax.f32 %v778_v23, 0.0 }
 0x24d   : > { %v1113_v26 = vpack.c.bf16 %v801_v25, %v800_v24 }
 0x24f   : > { %1129 = vst [vmem:[%s1645_s20 + $0x28] sm:$0xff] %v1113_v26  }
 0x250 PF: > { %p19_p4 = scmp.ge.s32.totalorder %s1552_s17, 4   ;;  %s1683_s24 = smov %s1427_s25 }
 0x251   : > { %s1684_s25 = smov %s1431_s26  ;;  %s1685_s26 = smov %s1563_s23 }
 0x252   : > { %s1686_s27 = smov %s1552_s17  ;;  %21 = sbr.rel (!%p19_p4) target bundleno = 5 (0x5), region = 104 }
 0x257   :  { %860 = vsyncpa [#allocation3], 1 }
 0x258   :  { %862 = vsyncpa [#allocation3 + $0x1], 1 }
 0x259   :  { %863 = vsyncpa [#allocation5], 1 }
 0x25a   :  { %864 = vsyncpa [#allocation8], 1 }

</bundles_post_ra>
